<compile_context>
chip_gen: v6e
topology: v6e:2x2x1
jax: 0.10.0
libtpu: 0.0.40
codegen_flags: <defaults>
</compile_context>

<pallas_src>
import jax
import jax.numpy as jnp
from jax.experimental import pallas as pl
from jax.experimental.pallas import tpu as pltpu


def _round_up(n, m):
    return ((n + m - 1) // m) * m


def _leaky_relu(x, slope=0.2):
    return jnp.where(x > 0, x, slope * x)


def _linear_vpu(x, w, b):
    """y = w @ x + b, unrolled on the VPU.

    x: (fin, T)   activations, batch on lanes
    w: (fout, fin) PyTorch-layout weight
    b: (fout, 1)   bias column
    returns (fout, T)
    """
    fin = w.shape[1]
    acc = b + w[:, 0:1] * x[0:1, :]          # (fout,1)*(1,T) -> (fout,T)
    for i in range(1, fin):
        acc = acc + w[:, i:i + 1] * x[i:i + 1, :]
    return acc


def discriminator_kernel(x_ref,
                         w1_ref, b1_ref,
                         w2_ref, b2_ref,
                         w3_ref, b3_ref,
                         w4_ref, b4_ref,
                         o_ref):
    x = x_ref[...]                                        # (din, T)

    h = _leaky_relu(_linear_vpu(x, w1_ref[...], b1_ref[...]))   # (16, T)
    h = _leaky_relu(_linear_vpu(h, w2_ref[...], b2_ref[...]))   # (16, T)
    h = _leaky_relu(_linear_vpu(h, w3_ref[...], b3_ref[...]))   # (2, T)
    logits = _linear_vpu(h, w4_ref[...], b4_ref[...])           # (2, T)

    # 2-class softmax == sigmoid of the signed logit difference.
    d = logits[0:1, :] - logits[1:2, :]                   # (1, T)
    p0 = 1.0 / (1.0 + jnp.exp(-d))                        # softmax_0
    p1 = 1.0 / (1.0 + jnp.exp(d))                         # softmax_1
    o_ref[...] = jnp.concatenate([p0, p1], axis=0)        # (2, T)


def discriminator_forward(x, params, tile_b=2048):
    """x: (B, input_dim) float32.

    params: PyTorch-layout weights w{k}: (out, in), biases b{k}: (out, 1).
    Returns (B, tagset_size) softmax probabilities.
    """
    B, input_dim = x.shape
    tagset_size = params["w4"].shape[0]

    # Batch goes on the lane axis -> tiles must be lane (128) aligned.
    b_aligned = _round_up(max(B, 1), 128)
    tile = min(_round_up(tile_b, 128), b_aligned)
    b_pad = _round_up(B, tile)

    xt = jnp.transpose(x)                                 # (input_dim, B)
    if b_pad != B:
        xt = jnp.pad(xt, ((0, 0), (0, b_pad - B)))

    param_list = [params["w1"], params["b1"],
                  params["w2"], params["b2"],
                  params["w3"], params["b3"],
                  params["w4"], params["b4"]]

    grid = (b_pad // tile,)

    in_specs = [pl.BlockSpec((input_dim, tile), lambda i: (0, i))]
    # Weights / biases: constant block -> DMA'd once, VMEM-resident.
    in_specs += [pl.BlockSpec(p.shape, lambda i: (0, 0)) for p in param_list]

    out_t = pl.pallas_call(
        discriminator_kernel,
        out_shape=jax.ShapeDtypeStruct((tagset_size, b_pad), jnp.float32),
        grid_spec=pltpu.PrefetchScalarGridSpec(
            num_scalar_prefetch=0,
            grid=grid,
            in_specs=in_specs,
            out_specs=pl.BlockSpec((tagset_size, tile), lambda i: (0, i)),
        ),
        compiler_params=pltpu.CompilerParams(
            dimension_semantics=("parallel",),
        ),
    )(xt, *param_list)

    return jnp.transpose(out_t[:, :B])                    # (B, tagset_size)


def init_params(key, input_dim=2, hidden_layer=(16, 16, 2), tagset_size=2):
    """Deterministic init matching PyTorch Linear shapes: w (out, in), b (out, 1)."""
    dims = [input_dim, hidden_layer[0], hidden_layer[1], hidden_layer[2], tagset_size]
    params = {}
    for i in range(4):
        fan_in, fan_out = dims[i], dims[i + 1]
        key, kw, kb = jax.random.split(key, 3)
        bound = 1.0 / (fan_in ** 0.5)
        params[f"w{i + 1}"] = jax.random.uniform(
            kw, (fan_out, fan_in), jnp.float32, -bound, bound)
        params[f"b{i + 1}"] = jax.random.uniform(
            kb, (fan_out, 1), jnp.float32, -bound, bound)
    return params


def reference_forward(x, params):
    h = x
    for i in range(1, 4):
        h = h @ params[f"w{i}"].T + params[f"b{i}"].T
        h = jnp.where(h > 0, h, 0.2 * h)
    logits = h @ params["w4"].T + params["b4"].T
    return jax.nn.softmax(logits, axis=-1)


if __name__ == "__main__":
    key = jax.random.PRNGKey(0)
    key, kx = jax.random.split(key)

    B, input_dim = 8, 2
    x = jax.random.normal(kx, (B, input_dim), jnp.float32)

    params = init_params(key, input_dim=input_dim,
                         hidden_layer=(16, 16, 2), tagset_size=2)

    out = discriminator_forward(x, params)
    out = jax.block_until_ready(out)

    ref = reference_forward(x, params)
    assert out.shape == (B, 2)
    assert jnp.allclose(out, ref, atol=1e-5, rtol=1e-5), "mismatch vs reference"
    assert jnp.allclose(jnp.sum(out, axis=-1), 1.0, atol=1e-5), "softmax rows must sum to 1"

    print("KERNEL_OK")
</pallas_src>

<mosaic_0001>
module attributes {stable_mosaic.version = 11 : i64} {
  func.func @discriminator_kernel(%arg0: i32, %arg1: memref<2x128xf32, #tpu.memory_space<vmem>>, %arg2: memref<16x2xf32, #tpu.memory_space<vmem>>, %arg3: memref<16x1xf32, #tpu.memory_space<vmem>>, %arg4: memref<16x16xf32, #tpu.memory_space<vmem>>, %arg5: memref<16x1xf32, #tpu.memory_space<vmem>>, %arg6: memref<2x16xf32, #tpu.memory_space<vmem>>, %arg7: memref<2x1xf32, #tpu.memory_space<vmem>>, %arg8: memref<2x2xf32, #tpu.memory_space<vmem>>, %arg9: memref<2x1xf32, #tpu.memory_space<vmem>>, %arg10: memref<2x128xf32, #tpu.memory_space<vmem>>) attributes {dimension_semantics = [#tpu.dimension_semantics<parallel>], iteration_bounds = array<i64: 1>, scalar_prefetch = 0 : i64, scratch_operands = 0 : i64, tpu.core_type = #tpu.core_type<tc>, window_params = [{transform_indices = @transform_0, window_bounds = array<i64: 2, 128>}, {pipeline_mode = #tpu.pipeline_mode<synchronous>, transform_indices = @transform_1, window_bounds = array<i64: 16, 2>}, {pipeline_mode = #tpu.pipeline_mode<synchronous>, transform_indices = @transform_2, window_bounds = array<i64: 16, 1>}, {pipeline_mode = #tpu.pipeline_mode<synchronous>, transform_indices = @transform_3, window_bounds = array<i64: 16, 16>}, {pipeline_mode = #tpu.pipeline_mode<synchronous>, transform_indices = @transform_4, window_bounds = array<i64: 16, 1>}, {pipeline_mode = #tpu.pipeline_mode<synchronous>, transform_indices = @transform_5, window_bounds = array<i64: 2, 16>}, {pipeline_mode = #tpu.pipeline_mode<synchronous>, transform_indices = @transform_6, window_bounds = array<i64: 2, 1>}, {pipeline_mode = #tpu.pipeline_mode<synchronous>, transform_indices = @transform_7, window_bounds = array<i64: 2, 2>}, {pipeline_mode = #tpu.pipeline_mode<synchronous>, transform_indices = @transform_8, window_bounds = array<i64: 2, 1>}, {transform_indices = @transform_9, window_bounds = array<i64: 2, 128>}]} {
    %c0 = arith.constant 0 : index
    %c0_0 = arith.constant 0 : index
    %0 = vector.load %arg1[%c0, %c0_0] : memref<2x128xf32, #tpu.memory_space<vmem>>, vector<2x128xf32>
    %c0_1 = arith.constant 0 : index
    %c0_2 = arith.constant 0 : index
    %1 = vector.load %arg2[%c0_1, %c0_2] : memref<16x2xf32, #tpu.memory_space<vmem>>, vector<16x2xf32>
    %c0_3 = arith.constant 0 : index
    %c0_4 = arith.constant 0 : index
    %2 = vector.load %arg3[%c0_3, %c0_4] : memref<16x1xf32, #tpu.memory_space<vmem>>, vector<16x1xf32>
    %3 = vector.extract_strided_slice %1 {offsets = [0, 0], sizes = [16, 1], strides = [1, 1]} : vector<16x2xf32> to vector<16x1xf32>
    %4 = vector.extract_strided_slice %0 {offsets = [0, 0], sizes = [1, 128], strides = [1, 1]} : vector<2x128xf32> to vector<1x128xf32>
    %5 = vector.broadcast %3 : vector<16x1xf32> to vector<16x128xf32>
    %6 = vector.broadcast %4 : vector<1x128xf32> to vector<16x128xf32>
    %7 = arith.mulf %5, %6 : vector<16x128xf32>
    %8 = vector.broadcast %2 : vector<16x1xf32> to vector<16x128xf32>
    %9 = arith.addf %8, %7 : vector<16x128xf32>
    %10 = vector.extract_strided_slice %1 {offsets = [0, 1], sizes = [16, 1], strides = [1, 1]} : vector<16x2xf32> to vector<16x1xf32>
    %11 = vector.extract_strided_slice %0 {offsets = [1, 0], sizes = [1, 128], strides = [1, 1]} : vector<2x128xf32> to vector<1x128xf32>
    %12 = vector.broadcast %10 : vector<16x1xf32> to vector<16x128xf32>
    %13 = vector.broadcast %11 : vector<1x128xf32> to vector<16x128xf32>
    %14 = arith.mulf %12, %13 : vector<16x128xf32>
    %15 = arith.addf %9, %14 : vector<16x128xf32>
    %cst = arith.constant 0.000000e+00 : f32
    %16 = vector.broadcast %cst : f32 to vector<16x128xf32>
    %17 = arith.cmpf ogt, %15, %16 : vector<16x128xf32>
    %cst_5 = arith.constant 2.000000e-01 : f32
    %18 = vector.broadcast %cst_5 : f32 to vector<16x128xf32>
    %19 = arith.mulf %18, %15 : vector<16x128xf32>
    %20 = arith.select %17, %15, %19 : vector<16x128xi1>, vector<16x128xf32>
    %c0_6 = arith.constant 0 : index
    %c0_7 = arith.constant 0 : index
    %21 = vector.load %arg4[%c0_6, %c0_7] : memref<16x16xf32, #tpu.memory_space<vmem>>, vector<16x16xf32>
    %c0_8 = arith.constant 0 : index
    %c0_9 = arith.constant 0 : index
    %22 = vector.load %arg5[%c0_8, %c0_9] : memref<16x1xf32, #tpu.memory_space<vmem>>, vector<16x1xf32>
    %23 = vector.extract_strided_slice %21 {offsets = [0, 0], sizes = [16, 1], strides = [1, 1]} : vector<16x16xf32> to vector<16x1xf32>
    %24 = vector.extract_strided_slice %20 {offsets = [0, 0], sizes = [1, 128], strides = [1, 1]} : vector<16x128xf32> to vector<1x128xf32>
    %25 = vector.broadcast %23 : vector<16x1xf32> to vector<16x128xf32>
    %26 = vector.broadcast %24 : vector<1x128xf32> to vector<16x128xf32>
    %27 = arith.mulf %25, %26 : vector<16x128xf32>
    %28 = vector.broadcast %22 : vector<16x1xf32> to vector<16x128xf32>
    %29 = arith.addf %28, %27 : vector<16x128xf32>
    %30 = vector.extract_strided_slice %21 {offsets = [0, 1], sizes = [16, 1], strides = [1, 1]} : vector<16x16xf32> to vector<16x1xf32>
    %31 = vector.extract_strided_slice %20 {offsets = [1, 0], sizes = [1, 128], strides = [1, 1]} : vector<16x128xf32> to vector<1x128xf32>
    %32 = vector.broadcast %30 : vector<16x1xf32> to vector<16x128xf32>
    %33 = vector.broadcast %31 : vector<1x128xf32> to vector<16x128xf32>
    %34 = arith.mulf %32, %33 : vector<16x128xf32>
    %35 = arith.addf %29, %34 : vector<16x128xf32>
    %36 = vector.extract_strided_slice %21 {offsets = [0, 2], sizes = [16, 1], strides = [1, 1]} : vector<16x16xf32> to vector<16x1xf32>
    %37 = vector.extract_strided_slice %20 {offsets = [2, 0], sizes = [1, 128], strides = [1, 1]} : vector<16x128xf32> to vector<1x128xf32>
    %38 = vector.broadcast %36 : vector<16x1xf32> to vector<16x128xf32>
    %39 = vector.broadcast %37 : vector<1x128xf32> to vector<16x128xf32>
    %40 = arith.mulf %38, %39 : vector<16x128xf32>
    %41 = arith.addf %35, %40 : vector<16x128xf32>
    %42 = vector.extract_strided_slice %21 {offsets = [0, 3], sizes = [16, 1], strides = [1, 1]} : vector<16x16xf32> to vector<16x1xf32>
    %43 = vector.extract_strided_slice %20 {offsets = [3, 0], sizes = [1, 128], strides = [1, 1]} : vector<16x128xf32> to vector<1x128xf32>
    %44 = vector.broadcast %42 : vector<16x1xf32> to vector<16x128xf32>
    %45 = vector.broadcast %43 : vector<1x128xf32> to vector<16x128xf32>
    %46 = arith.mulf %44, %45 : vector<16x128xf32>
    %47 = arith.addf %41, %46 : vector<16x128xf32>
    %48 = vector.extract_strided_slice %21 {offsets = [0, 4], sizes = [16, 1], strides = [1, 1]} : vector<16x16xf32> to vector<16x1xf32>
    %49 = vector.extract_strided_slice %20 {offsets = [4, 0], sizes = [1, 128], strides = [1, 1]} : vector<16x128xf32> to vector<1x128xf32>
    %50 = vector.broadcast %48 : vector<16x1xf32> to vector<16x128xf32>
    %51 = vector.broadcast %49 : vector<1x128xf32> to vector<16x128xf32>
    %52 = arith.mulf %50, %51 : vector<16x128xf32>
    %53 = arith.addf %47, %52 : vector<16x128xf32>
    %54 = vector.extract_strided_slice %21 {offsets = [0, 5], sizes = [16, 1], strides = [1, 1]} : vector<16x16xf32> to vector<16x1xf32>
    %55 = vector.extract_strided_slice %20 {offsets = [5, 0], sizes = [1, 128], strides = [1, 1]} : vector<16x128xf32> to vector<1x128xf32>
    %56 = vector.broadcast %54 : vector<16x1xf32> to vector<16x128xf32>
    %57 = vector.broadcast %55 : vector<1x128xf32> to vector<16x128xf32>
    %58 = arith.mulf %56, %57 : vector<16x128xf32>
    %59 = arith.addf %53, %58 : vector<16x128xf32>
    %60 = vector.extract_strided_slice %21 {offsets = [0, 6], sizes = [16, 1], strides = [1, 1]} : vector<16x16xf32> to vector<16x1xf32>
    %61 = vector.extract_strided_slice %20 {offsets = [6, 0], sizes = [1, 128], strides = [1, 1]} : vector<16x128xf32> to vector<1x128xf32>
    %62 = vector.broadcast %60 : vector<16x1xf32> to vector<16x128xf32>
    %63 = vector.broadcast %61 : vector<1x128xf32> to vector<16x128xf32>
    %64 = arith.mulf %62, %63 : vector<16x128xf32>
    %65 = arith.addf %59, %64 : vector<16x128xf32>
    %66 = vector.extract_strided_slice %21 {offsets = [0, 7], sizes = [16, 1], strides = [1, 1]} : vector<16x16xf32> to vector<16x1xf32>
    %67 = vector.extract_strided_slice %20 {offsets = [7, 0], sizes = [1, 128], strides = [1, 1]} : vector<16x128xf32> to vector<1x128xf32>
    %68 = vector.broadcast %66 : vector<16x1xf32> to vector<16x128xf32>
    %69 = vector.broadcast %67 : vector<1x128xf32> to vector<16x128xf32>
    %70 = arith.mulf %68, %69 : vector<16x128xf32>
    %71 = arith.addf %65, %70 : vector<16x128xf32>
    %72 = vector.extract_strided_slice %21 {offsets = [0, 8], sizes = [16, 1], strides = [1, 1]} : vector<16x16xf32> to vector<16x1xf32>
    %73 = vector.extract_strided_slice %20 {offsets = [8, 0], sizes = [1, 128], strides = [1, 1]} : vector<16x128xf32> to vector<1x128xf32>
    %74 = vector.broadcast %72 : vector<16x1xf32> to vector<16x128xf32>
    %75 = vector.broadcast %73 : vector<1x128xf32> to vector<16x128xf32>
    %76 = arith.mulf %74, %75 : vector<16x128xf32>
    %77 = arith.addf %71, %76 : vector<16x128xf32>
    %78 = vector.extract_strided_slice %21 {offsets = [0, 9], sizes = [16, 1], strides = [1, 1]} : vector<16x16xf32> to vector<16x1xf32>
    %79 = vector.extract_strided_slice %20 {offsets = [9, 0], sizes = [1, 128], strides = [1, 1]} : vector<16x128xf32> to vector<1x128xf32>
    %80 = vector.broadcast %78 : vector<16x1xf32> to vector<16x128xf32>
    %81 = vector.broadcast %79 : vector<1x128xf32> to vector<16x128xf32>
    %82 = arith.mulf %80, %81 : vector<16x128xf32>
    %83 = arith.addf %77, %82 : vector<16x128xf32>
    %84 = vector.extract_strided_slice %21 {offsets = [0, 10], sizes = [16, 1], strides = [1, 1]} : vector<16x16xf32> to vector<16x1xf32>
    %85 = vector.extract_strided_slice %20 {offsets = [10, 0], sizes = [1, 128], strides = [1, 1]} : vector<16x128xf32> to vector<1x128xf32>
    %86 = vector.broadcast %84 : vector<16x1xf32> to vector<16x128xf32>
    %87 = vector.broadcast %85 : vector<1x128xf32> to vector<16x128xf32>
    %88 = arith.mulf %86, %87 : vector<16x128xf32>
    %89 = arith.addf %83, %88 : vector<16x128xf32>
    %90 = vector.extract_strided_slice %21 {offsets = [0, 11], sizes = [16, 1], strides = [1, 1]} : vector<16x16xf32> to vector<16x1xf32>
    %91 = vector.extract_strided_slice %20 {offsets = [11, 0], sizes = [1, 128], strides = [1, 1]} : vector<16x128xf32> to vector<1x128xf32>
    %92 = vector.broadcast %90 : vector<16x1xf32> to vector<16x128xf32>
    %93 = vector.broadcast %91 : vector<1x128xf32> to vector<16x128xf32>
    %94 = arith.mulf %92, %93 : vector<16x128xf32>
    %95 = arith.addf %89, %94 : vector<16x128xf32>
    %96 = vector.extract_strided_slice %21 {offsets = [0, 12], sizes = [16, 1], strides = [1, 1]} : vector<16x16xf32> to vector<16x1xf32>
    %97 = vector.extract_strided_slice %20 {offsets = [12, 0], sizes = [1, 128], strides = [1, 1]} : vector<16x128xf32> to vector<1x128xf32>
    %98 = vector.broadcast %96 : vector<16x1xf32> to vector<16x128xf32>
    %99 = vector.broadcast %97 : vector<1x128xf32> to vector<16x128xf32>
    %100 = arith.mulf %98, %99 : vector<16x128xf32>
    %101 = arith.addf %95, %100 : vector<16x128xf32>
    %102 = vector.extract_strided_slice %21 {offsets = [0, 13], sizes = [16, 1], strides = [1, 1]} : vector<16x16xf32> to vector<16x1xf32>
    %103 = vector.extract_strided_slice %20 {offsets = [13, 0], sizes = [1, 128], strides = [1, 1]} : vector<16x128xf32> to vector<1x128xf32>
    %104 = vector.broadcast %102 : vector<16x1xf32> to vector<16x128xf32>
    %105 = vector.broadcast %103 : vector<1x128xf32> to vector<16x128xf32>
    %106 = arith.mulf %104, %105 : vector<16x128xf32>
    %107 = arith.addf %101, %106 : vector<16x128xf32>
    %108 = vector.extract_strided_slice %21 {offsets = [0, 14], sizes = [16, 1], strides = [1, 1]} : vector<16x16xf32> to vector<16x1xf32>
    %109 = vector.extract_strided_slice %20 {offsets = [14, 0], sizes = [1, 128], strides = [1, 1]} : vector<16x128xf32> to vector<1x128xf32>
    %110 = vector.broadcast %108 : vector<16x1xf32> to vector<16x128xf32>
    %111 = vector.broadcast %109 : vector<1x128xf32> to vector<16x128xf32>
    %112 = arith.mulf %110, %111 : vector<16x128xf32>
    %113 = arith.addf %107, %112 : vector<16x128xf32>
    %114 = vector.extract_strided_slice %21 {offsets = [0, 15], sizes = [16, 1], strides = [1, 1]} : vector<16x16xf32> to vector<16x1xf32>
    %115 = vector.extract_strided_slice %20 {offsets = [15, 0], sizes = [1, 128], strides = [1, 1]} : vector<16x128xf32> to vector<1x128xf32>
    %116 = vector.broadcast %114 : vector<16x1xf32> to vector<16x128xf32>
    %117 = vector.broadcast %115 : vector<1x128xf32> to vector<16x128xf32>
    %118 = arith.mulf %116, %117 : vector<16x128xf32>
    %119 = arith.addf %113, %118 : vector<16x128xf32>
    %cst_10 = arith.constant 0.000000e+00 : f32
    %120 = vector.broadcast %cst_10 : f32 to vector<16x128xf32>
    %121 = arith.cmpf ogt, %119, %120 : vector<16x128xf32>
    %cst_11 = arith.constant 2.000000e-01 : f32
    %122 = vector.broadcast %cst_11 : f32 to vector<16x128xf32>
    %123 = arith.mulf %122, %119 : vector<16x128xf32>
    %124 = arith.select %121, %119, %123 : vector<16x128xi1>, vector<16x128xf32>
    %c0_12 = arith.constant 0 : index
    %c0_13 = arith.constant 0 : index
    %125 = vector.load %arg6[%c0_12, %c0_13] : memref<2x16xf32, #tpu.memory_space<vmem>>, vector<2x16xf32>
    %c0_14 = arith.constant 0 : index
    %c0_15 = arith.constant 0 : index
    %126 = vector.load %arg7[%c0_14, %c0_15] : memref<2x1xf32, #tpu.memory_space<vmem>>, vector<2x1xf32>
    %127 = vector.extract_strided_slice %125 {offsets = [0, 0], sizes = [2, 1], strides = [1, 1]} : vector<2x16xf32> to vector<2x1xf32>
    %128 = vector.extract_strided_slice %124 {offsets = [0, 0], sizes = [1, 128], strides = [1, 1]} : vector<16x128xf32> to vector<1x128xf32>
    %129 = vector.broadcast %127 : vector<2x1xf32> to vector<2x128xf32>
    %130 = vector.broadcast %128 : vector<1x128xf32> to vector<2x128xf32>
    %131 = arith.mulf %129, %130 : vector<2x128xf32>
    %132 = vector.broadcast %126 : vector<2x1xf32> to vector<2x128xf32>
    %133 = arith.addf %132, %131 : vector<2x128xf32>
    %134 = vector.extract_strided_slice %125 {offsets = [0, 1], sizes = [2, 1], strides = [1, 1]} : vector<2x16xf32> to vector<2x1xf32>
    %135 = vector.extract_strided_slice %124 {offsets = [1, 0], sizes = [1, 128], strides = [1, 1]} : vector<16x128xf32> to vector<1x128xf32>
    %136 = vector.broadcast %134 : vector<2x1xf32> to vector<2x128xf32>
    %137 = vector.broadcast %135 : vector<1x128xf32> to vector<2x128xf32>
    %138 = arith.mulf %136, %137 : vector<2x128xf32>
    %139 = arith.addf %133, %138 : vector<2x128xf32>
    %140 = vector.extract_strided_slice %125 {offsets = [0, 2], sizes = [2, 1], strides = [1, 1]} : vector<2x16xf32> to vector<2x1xf32>
    %141 = vector.extract_strided_slice %124 {offsets = [2, 0], sizes = [1, 128], strides = [1, 1]} : vector<16x128xf32> to vector<1x128xf32>
    %142 = vector.broadcast %140 : vector<2x1xf32> to vector<2x128xf32>
    %143 = vector.broadcast %141 : vector<1x128xf32> to vector<2x128xf32>
    %144 = arith.mulf %142, %143 : vector<2x128xf32>
    %145 = arith.addf %139, %144 : vector<2x128xf32>
    %146 = vector.extract_strided_slice %125 {offsets = [0, 3], sizes = [2, 1], strides = [1, 1]} : vector<2x16xf32> to vector<2x1xf32>
    %147 = vector.extract_strided_slice %124 {offsets = [3, 0], sizes = [1, 128], strides = [1, 1]} : vector<16x128xf32> to vector<1x128xf32>
    %148 = vector.broadcast %146 : vector<2x1xf32> to vector<2x128xf32>
    %149 = vector.broadcast %147 : vector<1x128xf32> to vector<2x128xf32>
    %150 = arith.mulf %148, %149 : vector<2x128xf32>
    %151 = arith.addf %145, %150 : vector<2x128xf32>
    %152 = vector.extract_strided_slice %125 {offsets = [0, 4], sizes = [2, 1], strides = [1, 1]} : vector<2x16xf32> to vector<2x1xf32>
    %153 = vector.extract_strided_slice %124 {offsets = [4, 0], sizes = [1, 128], strides = [1, 1]} : vector<16x128xf32> to vector<1x128xf32>
    %154 = vector.broadcast %152 : vector<2x1xf32> to vector<2x128xf32>
    %155 = vector.broadcast %153 : vector<1x128xf32> to vector<2x128xf32>
    %156 = arith.mulf %154, %155 : vector<2x128xf32>
    %157 = arith.addf %151, %156 : vector<2x128xf32>
    %158 = vector.extract_strided_slice %125 {offsets = [0, 5], sizes = [2, 1], strides = [1, 1]} : vector<2x16xf32> to vector<2x1xf32>
    %159 = vector.extract_strided_slice %124 {offsets = [5, 0], sizes = [1, 128], strides = [1, 1]} : vector<16x128xf32> to vector<1x128xf32>
    %160 = vector.broadcast %158 : vector<2x1xf32> to vector<2x128xf32>
    %161 = vector.broadcast %159 : vector<1x128xf32> to vector<2x128xf32>
    %162 = arith.mulf %160, %161 : vector<2x128xf32>
    %163 = arith.addf %157, %162 : vector<2x128xf32>
    %164 = vector.extract_strided_slice %125 {offsets = [0, 6], sizes = [2, 1], strides = [1, 1]} : vector<2x16xf32> to vector<2x1xf32>
    %165 = vector.extract_strided_slice %124 {offsets = [6, 0], sizes = [1, 128], strides = [1, 1]} : vector<16x128xf32> to vector<1x128xf32>
    %166 = vector.broadcast %164 : vector<2x1xf32> to vector<2x128xf32>
    %167 = vector.broadcast %165 : vector<1x128xf32> to vector<2x128xf32>
    %168 = arith.mulf %166, %167 : vector<2x128xf32>
    %169 = arith.addf %163, %168 : vector<2x128xf32>
    %170 = vector.extract_strided_slice %125 {offsets = [0, 7], sizes = [2, 1], strides = [1, 1]} : vector<2x16xf32> to vector<2x1xf32>
    %171 = vector.extract_strided_slice %124 {offsets = [7, 0], sizes = [1, 128], strides = [1, 1]} : vector<16x128xf32> to vector<1x128xf32>
    %172 = vector.broadcast %170 : vector<2x1xf32> to vector<2x128xf32>
    %173 = vector.broadcast %171 : vector<1x128xf32> to vector<2x128xf32>
    %174 = arith.mulf %172, %173 : vector<2x128xf32>
    %175 = arith.addf %169, %174 : vector<2x128xf32>
    %176 = vector.extract_strided_slice %125 {offsets = [0, 8], sizes = [2, 1], strides = [1, 1]} : vector<2x16xf32> to vector<2x1xf32>
    %177 = vector.extract_strided_slice %124 {offsets = [8, 0], sizes = [1, 128], strides = [1, 1]} : vector<16x128xf32> to vector<1x128xf32>
    %178 = vector.broadcast %176 : vector<2x1xf32> to vector<2x128xf32>
    %179 = vector.broadcast %177 : vector<1x128xf32> to vector<2x128xf32>
    %180 = arith.mulf %178, %179 : vector<2x128xf32>
    %181 = arith.addf %175, %180 : vector<2x128xf32>
    %182 = vector.extract_strided_slice %125 {offsets = [0, 9], sizes = [2, 1], strides = [1, 1]} : vector<2x16xf32> to vector<2x1xf32>
    %183 = vector.extract_strided_slice %124 {offsets = [9, 0], sizes = [1, 128], strides = [1, 1]} : vector<16x128xf32> to vector<1x128xf32>
    %184 = vector.broadcast %182 : vector<2x1xf32> to vector<2x128xf32>
    %185 = vector.broadcast %183 : vector<1x128xf32> to vector<2x128xf32>
    %186 = arith.mulf %184, %185 : vector<2x128xf32>
    %187 = arith.addf %181, %186 : vector<2x128xf32>
    %188 = vector.extract_strided_slice %125 {offsets = [0, 10], sizes = [2, 1], strides = [1, 1]} : vector<2x16xf32> to vector<2x1xf32>
    %189 = vector.extract_strided_slice %124 {offsets = [10, 0], sizes = [1, 128], strides = [1, 1]} : vector<16x128xf32> to vector<1x128xf32>
    %190 = vector.broadcast %188 : vector<2x1xf32> to vector<2x128xf32>
    %191 = vector.broadcast %189 : vector<1x128xf32> to vector<2x128xf32>
    %192 = arith.mulf %190, %191 : vector<2x128xf32>
    %193 = arith.addf %187, %192 : vector<2x128xf32>
    %194 = vector.extract_strided_slice %125 {offsets = [0, 11], sizes = [2, 1], strides = [1, 1]} : vector<2x16xf32> to vector<2x1xf32>
    %195 = vector.extract_strided_slice %124 {offsets = [11, 0], sizes = [1, 128], strides = [1, 1]} : vector<16x128xf32> to vector<1x128xf32>
    %196 = vector.broadcast %194 : vector<2x1xf32> to vector<2x128xf32>
    %197 = vector.broadcast %195 : vector<1x128xf32> to vector<2x128xf32>
    %198 = arith.mulf %196, %197 : vector<2x128xf32>
    %199 = arith.addf %193, %198 : vector<2x128xf32>
    %200 = vector.extract_strided_slice %125 {offsets = [0, 12], sizes = [2, 1], strides = [1, 1]} : vector<2x16xf32> to vector<2x1xf32>
    %201 = vector.extract_strided_slice %124 {offsets = [12, 0], sizes = [1, 128], strides = [1, 1]} : vector<16x128xf32> to vector<1x128xf32>
    %202 = vector.broadcast %200 : vector<2x1xf32> to vector<2x128xf32>
    %203 = vector.broadcast %201 : vector<1x128xf32> to vector<2x128xf32>
    %204 = arith.mulf %202, %203 : vector<2x128xf32>
    %205 = arith.addf %199, %204 : vector<2x128xf32>
    %206 = vector.extract_strided_slice %125 {offsets = [0, 13], sizes = [2, 1], strides = [1, 1]} : vector<2x16xf32> to vector<2x1xf32>
    %207 = vector.extract_strided_slice %124 {offsets = [13, 0], sizes = [1, 128], strides = [1, 1]} : vector<16x128xf32> to vector<1x128xf32>
    %208 = vector.broadcast %206 : vector<2x1xf32> to vector<2x128xf32>
    %209 = vector.broadcast %207 : vector<1x128xf32> to vector<2x128xf32>
    %210 = arith.mulf %208, %209 : vector<2x128xf32>
    %211 = arith.addf %205, %210 : vector<2x128xf32>
    %212 = vector.extract_strided_slice %125 {offsets = [0, 14], sizes = [2, 1], strides = [1, 1]} : vector<2x16xf32> to vector<2x1xf32>
    %213 = vector.extract_strided_slice %124 {offsets = [14, 0], sizes = [1, 128], strides = [1, 1]} : vector<16x128xf32> to vector<1x128xf32>
    %214 = vector.broadcast %212 : vector<2x1xf32> to vector<2x128xf32>
    %215 = vector.broadcast %213 : vector<1x128xf32> to vector<2x128xf32>
    %216 = arith.mulf %214, %215 : vector<2x128xf32>
    %217 = arith.addf %211, %216 : vector<2x128xf32>
    %218 = vector.extract_strided_slice %125 {offsets = [0, 15], sizes = [2, 1], strides = [1, 1]} : vector<2x16xf32> to vector<2x1xf32>
    %219 = vector.extract_strided_slice %124 {offsets = [15, 0], sizes = [1, 128], strides = [1, 1]} : vector<16x128xf32> to vector<1x128xf32>
    %220 = vector.broadcast %218 : vector<2x1xf32> to vector<2x128xf32>
    %221 = vector.broadcast %219 : vector<1x128xf32> to vector<2x128xf32>
    %222 = arith.mulf %220, %221 : vector<2x128xf32>
    %223 = arith.addf %217, %222 : vector<2x128xf32>
    %cst_16 = arith.constant 0.000000e+00 : f32
    %224 = vector.broadcast %cst_16 : f32 to vector<2x128xf32>
    %225 = arith.cmpf ogt, %223, %224 : vector<2x128xf32>
    %cst_17 = arith.constant 2.000000e-01 : f32
    %226 = vector.broadcast %cst_17 : f32 to vector<2x128xf32>
    %227 = arith.mulf %226, %223 : vector<2x128xf32>
    %228 = arith.select %225, %223, %227 : vector<2x128xi1>, vector<2x128xf32>
    %c0_18 = arith.constant 0 : index
    %c0_19 = arith.constant 0 : index
    %229 = vector.load %arg8[%c0_18, %c0_19] : memref<2x2xf32, #tpu.memory_space<vmem>>, vector<2x2xf32>
    %c0_20 = arith.constant 0 : index
    %c0_21 = arith.constant 0 : index
    %230 = vector.load %arg9[%c0_20, %c0_21] : memref<2x1xf32, #tpu.memory_space<vmem>>, vector<2x1xf32>
    %231 = vector.extract_strided_slice %229 {offsets = [0, 0], sizes = [2, 1], strides = [1, 1]} : vector<2x2xf32> to vector<2x1xf32>
    %232 = vector.extract_strided_slice %228 {offsets = [0, 0], sizes = [1, 128], strides = [1, 1]} : vector<2x128xf32> to vector<1x128xf32>
    %233 = vector.broadcast %231 : vector<2x1xf32> to vector<2x128xf32>
    %234 = vector.broadcast %232 : vector<1x128xf32> to vector<2x128xf32>
    %235 = arith.mulf %233, %234 : vector<2x128xf32>
    %236 = vector.broadcast %230 : vector<2x1xf32> to vector<2x128xf32>
    %237 = arith.addf %236, %235 : vector<2x128xf32>
    %238 = vector.extract_strided_slice %229 {offsets = [0, 1], sizes = [2, 1], strides = [1, 1]} : vector<2x2xf32> to vector<2x1xf32>
    %239 = vector.extract_strided_slice %228 {offsets = [1, 0], sizes = [1, 128], strides = [1, 1]} : vector<2x128xf32> to vector<1x128xf32>
    %240 = vector.broadcast %238 : vector<2x1xf32> to vector<2x128xf32>
    %241 = vector.broadcast %239 : vector<1x128xf32> to vector<2x128xf32>
    %242 = arith.mulf %240, %241 : vector<2x128xf32>
    %243 = arith.addf %237, %242 : vector<2x128xf32>
    %244 = vector.extract_strided_slice %243 {offsets = [0, 0], sizes = [1, 128], strides = [1, 1]} : vector<2x128xf32> to vector<1x128xf32>
    %245 = vector.extract_strided_slice %243 {offsets = [1, 0], sizes = [1, 128], strides = [1, 1]} : vector<2x128xf32> to vector<1x128xf32>
    %246 = arith.subf %244, %245 : vector<1x128xf32>
    %cst_22 = arith.constant 0.000000e+00 : f32
    %247 = vector.broadcast %cst_22 : f32 to vector<1x128xf32>
    %248 = arith.subf %247, %246 : vector<1x128xf32>
    %249 = math.exp %248 : vector<1x128xf32>
    %cst_23 = arith.constant 1.000000e+00 : f32
    %250 = vector.broadcast %cst_23 : f32 to vector<1x128xf32>
    %251 = arith.addf %250, %249 : vector<1x128xf32>
    %cst_24 = arith.constant 1.000000e+00 : f32
    %252 = vector.broadcast %cst_24 : f32 to vector<1x128xf32>
    %253 = arith.divf %252, %251 : vector<1x128xf32>
    %254 = math.exp %246 : vector<1x128xf32>
    %cst_25 = arith.constant 1.000000e+00 : f32
    %255 = vector.broadcast %cst_25 : f32 to vector<1x128xf32>
    %256 = arith.addf %255, %254 : vector<1x128xf32>
    %cst_26 = arith.constant 1.000000e+00 : f32
    %257 = vector.broadcast %cst_26 : f32 to vector<1x128xf32>
    %258 = arith.divf %257, %256 : vector<1x128xf32>
    %259 = tpu.concatenate %253, %258 in 0 : vector<1x128xf32>, vector<1x128xf32> -> vector<2x128xf32>
    %c0_27 = arith.constant 0 : index
    %c0_28 = arith.constant 0 : index
    %260 = vector.load %arg10[%c0_27, %c0_28] : memref<2x128xf32, #tpu.memory_space<vmem>>, vector<2x128xf32>
    tpu.vector_store %arg10[%c0_27, %c0_28], %259 {strides = array<i32>} : memref<2x128xf32, #tpu.memory_space<vmem>>, vector<2x128xf32>,
    return
  }
  func.func @transform_0(%arg0: i32) -> (i32, i32) {
    %c0_i32 = arith.constant 0 : i32
    %c0_i32_0 = arith.constant 0 : i32
    return %c0_i32, %arg0 : i32, i32
  }
  func.func @transform_1(%arg0: i32) -> (i32, i32) {
    %c0_i32 = arith.constant 0 : i32
    %c0_i32_0 = arith.constant 0 : i32
    %c0_i32_1 = arith.constant 0 : i32
    return %c0_i32, %c0_i32_0 : i32, i32
  }
  func.func @transform_2(%arg0: i32) -> (i32, i32) {
    %c0_i32 = arith.constant 0 : i32
    %c0_i32_0 = arith.constant 0 : i32
    %c0_i32_1 = arith.constant 0 : i32
    return %c0_i32, %c0_i32_0 : i32, i32
  }
  func.func @transform_3(%arg0: i32) -> (i32, i32) {
    %c0_i32 = arith.constant 0 : i32
    %c0_i32_0 = arith.constant 0 : i32
    %c0_i32_1 = arith.constant 0 : i32
    return %c0_i32, %c0_i32_0 : i32, i32
  }
  func.func @transform_4(%arg0: i32) -> (i32, i32) {
    %c0_i32 = arith.constant 0 : i32
    %c0_i32_0 = arith.constant 0 : i32
    %c0_i32_1 = arith.constant 0 : i32
    return %c0_i32, %c0_i32_0 : i32, i32
  }
  func.func @transform_5(%arg0: i32) -> (i32, i32) {
    %c0_i32 = arith.constant 0 : i32
    %c0_i32_0 = arith.constant 0 : i32
    %c0_i32_1 = arith.constant 0 : i32
    return %c0_i32, %c0_i32_0 : i32, i32
  }
  func.func @transform_6(%arg0: i32) -> (i32, i32) {
    %c0_i32 = arith.constant 0 : i32
    %c0_i32_0 = arith.constant 0 : i32
    %c0_i32_1 = arith.constant 0 : i32
    return %c0_i32, %c0_i32_0 : i32, i32
  }
  func.func @transform_7(%arg0: i32) -> (i32, i32) {
    %c0_i32 = arith.constant 0 : i32
    %c0_i32_0 = arith.constant 0 : i32
    %c0_i32_1 = arith.constant 0 : i32
    return %c0_i32, %c0_i32_0 : i32, i32
  }
  func.func @transform_8(%arg0: i32) -> (i32, i32) {
    %c0_i32 = arith.constant 0 : i32
    %c0_i32_0 = arith.constant 0 : i32
    %c0_i32_1 = arith.constant 0 : i32
    return %c0_i32, %c0_i32_0 : i32, i32
  }
  func.func @transform_9(%arg0: i32) -> (i32, i32) {
    %c0_i32 = arith.constant 0 : i32
    %c0_i32_0 = arith.constant 0 : i32
    return %c0_i32, %arg0 : i32, i32
  }
}

</mosaic_0001>

<bundles_post_ra>
// kernel: tpu_custom_call.1
= control target key start
LH: loop header
LB: loop body
LE: loop exit
PB: predicated region body
PF: predicated region fallthrough
CT: control target
= control target key end

     0   :  { %v698_v2 = vmov 0   ;;  %s968_s0 = inlined_call_operand.vmem [shape: f32[2,128], index: 0, kind: input, shape index: {}]   ;;  %s969_s1 = inlined_call_operand.vmem [shape: f32[16,2], index: 1, kind: input, shape index: {}]   ;;  %s970_s2 = inlined_call_operand.vmem [shape: f32[16,1], index: 2, kind: input, shape index: {}]   ;;  %s971_s3 = inlined_call_operand.vmem [shape: f32[16,16], index: 3, kind: input, shape index: {}]   ;;  %s972_s4 = inlined_call_operand.vmem [shape: f32[16,1], index: 4, kind: input, shape index: {}]   ;;  %s973_s5 = inlined_call_operand.vmem [shape: f32[2,16], index: 5, kind: input, shape index: {}]   ;;  %s974_s6 = inlined_call_operand.vmem [shape: f32[2,1], index: 6, kind: input, shape index: {}]   ;;  %s975_s7 = inlined_call_operand.vmem [shape: f32[2,2], index: 7, kind: input, shape index: {}]   ;;  %s976_s8 = inlined_call_operand.vmem [shape: f32[2,1], index: 8, kind: input, shape index: {}]   ;;  %s977_s9 = inlined_call_operand.hbm [shape: f32[2,128], index: 9, kind: output, shape index: {}]  }
   0x1   :  { %v36_v0 = vld [vmem:[%s970_s2] sm:$0xff]  ;;  %618 = vset.pattern.permute.xlu1 %v698_v2  ;;  %617 = vset.pattern.permute.xlu0 %v698_v2  ;;  %v37_v3 = vld [vmem:[%s970_s2 + $0x8] sm:$0xff] }
   0x2   :  { %v34_v1 = vld [vmem:[%s969_s1] sm:$0xff]  ;;  %56 = vperm.xlu1 %618, %v36_v0   ;;  %v35_v4 = vld [vmem:[%s969_s1 + $0x8] sm:$0xff] }
   0x3   :  { %40 = vperm.xlu0 %617, %v34_v1  }
   0x4   :  { %14 = vsyncpa [#allocation3], 0  ;;  %v782_v5 = vld [vmem:[%s971_s3 + $0x8] sm:$0xff]  ;;  %v699_v6 = vmov 1   ;;  %v789_v7 = vld [vmem:[%s971_s3] sm:$0xff]  ;;  %v700_v10 = vmov 2   ;;  %v48_v27 = vlaneseq }
   0x5   :  { %v90_v8 = vld [vmem:[%s972_s4] sm:$0xff]  ;;  %v91_v9 = vld [vmem:[%s972_s4 + $0x8] sm:$0xff]  ;;  %v701_v11 = vmov 4   ;;  %v702_v12 = vmov 7   ;;  %v703_v13 = vmov 3   ;;  %v704_v14 = vmov 6  }
   0x6   :  { %61 = vperm.xlu1 %618, %v37_v3   ;;  %v705_v15 = vmov 15   ;;  %v706_v16 = vmov 5   ;;  %v707_v17 = vmov 10   ;;  %v708_v18 = vmov 8   ;;  %v835_v23 = vld [vmem:[%s973_s5] sm:$0x3] }
   0x7   :  { %45 = vperm.xlu0 %617, %v35_v4   ;;  %v709_v19 = vmov 12   ;;  %v710_v20 = vmov 9   ;;  %v711_v21 = vmov 13   ;;  %v712_v22 = vmov 11   ;;  %v538_v25 = vld [vmem:[%s976_s8] sm:$0x3] }
   0x8   :  { %v713_v24 = vmov 14   ;;  %v367_v26 = vld [vmem:[%s974_s6] sm:$0x3]  ;;  %v865_v28 = vshrl.u32 %v48_v27, 7  ;;  %vm583_vm5 = vcmask 1040384  }
   0x9   :  { %v33_v32 = vld [vmem:[%s968_s0] sm:$0x3] }
   0xa   :  { %619 = vset.pattern.permute.xlu1 %v699_v6  ;;  %v869_v30 = vsub.s32 0, %v865_v28  ;;  %v877_v33 = vsub.s32 1, %v865_v28  ;;  %v892_v57 = vsub.s32 2, %v865_v28  ;;  %v914_v27 = vsub.s32 5, %v865_v28 }
   0xb   :  { %99 = vperm.xlu0 %617, %v782_v5   ;;  %71 = vperm.xlu1 %619, %v35_v4  }
   0xc   :  { %v51_v34 = vrot.slane %v33_v32, %v869_v30  ;;  %v77_v38 = vrot.slane %v33_v32, %v877_v33 }
   0xf   :  { %621 = vset.pattern.permute.xlu0 %v699_v6  ;;  %620 = vset.pattern.permute.xlu1 %v698_v2 }
  0x10   :  { %67 = vperm.xlu0 %621, %v34_v1   ;;  %94 = vperm.xlu1 %620, %v789_v7  }
  0x14   :  { %121 = vperm.xlu0 %621, %v789_v7   ;;  %110 = vperm.xlu1 %620, %v90_v8  }
  0x18   :  { %624 = vset.pattern.permute.xlu0 %v700_v10  ;;  %115 = vperm.xlu1 %620, %v91_v9  }
  0x19   :  { %141 = vperm.xlu0 %624, %v782_v5  }
  0x1c   :  { %622 = vset.pattern.permute.xlu1 %v699_v6 }
  0x1d   :  { %626 = vset.pattern.permute.xlu0 %v701_v11  ;;  %125 = vperm.xlu1 %622, %v782_v5  }
  0x1e   :  { %169 = vperm.xlu0 %626, %v789_v7  }
  0x21   :  { %623 = vset.pattern.permute.xlu1 %v700_v10 }
  0x22   :  { %629 = vset.pattern.permute.xlu0 %v702_v12  ;;  %137 = vperm.xlu1 %623, %v789_v7  }
  0x23   :  { %217 = vperm.xlu0 %629, %v789_v7  }
  0x26   :  { %625 = vset.pattern.permute.xlu1 %v703_v13 }
  0x27   :  { %636 = vset.pattern.permute.xlu0 %v704_v14  ;;  %153 = vperm.xlu1 %625, %v789_v7  }
  0x28   :  { %205 = vperm.xlu0 %636, %v782_v5  }
  0x2b   :  { %157 = vperm.xlu1 %625, %v782_v5  }
  0x2c   :  { %639 = vset.pattern.permute.xlu0 %v705_v15 }
  0x2d   :  { %345 = vperm.xlu0 %639, %v789_v7  }
  0x2f   :  { %627 = vset.pattern.permute.xlu1 %v706_v16 }
  0x30   :  { %185 = vperm.xlu1 %627, %v789_v7  }
  0x31   :  { %640 = vset.pattern.permute.xlu0 %v707_v17 }
  0x32   :  { %265 = vperm.xlu0 %640, %v789_v7  }
  0x34   :  { %628 = vset.pattern.permute.xlu1 %v704_v14 }
  0x35   :  { %201 = vperm.xlu1 %628, %v789_v7  }
  0x36   :  { %269 = vperm.xlu0 %640, %v782_v5  }
  0x39   :  { %630 = vset.pattern.permute.xlu1 %v708_v18 }
  0x3a   :  { %643 = vset.pattern.permute.xlu0 %v709_v19  ;;  %233 = vperm.xlu1 %630, %v789_v7  }
  0x3b   :  { %297 = vperm.xlu0 %643, %v789_v7  }
  0x3e   :  { %631 = vset.pattern.permute.xlu1 %v710_v20 }
  0x3f   :  { %301 = vperm.xlu0 %643, %v782_v5   ;;  %249 = vperm.xlu1 %631, %v789_v7  }
  0x43   :  { %647 = vset.pattern.permute.xlu0 %v711_v21  ;;  %632 = vset.pattern.permute.xlu1 %v712_v22 }
  0x44   :  { %317 = vperm.xlu0 %647, %v782_v5   ;;  %281 = vperm.xlu1 %632, %v789_v7  }
  0x48   :  { %650 = vset.pattern.permute.xlu0 %v703_v13  ;;  %633 = vset.pattern.permute.xlu1 %v701_v11 }
  0x49   :  { %405 = vperm.xlu0 %650, %v835_v23   ;;  %173 = vperm.xlu1 %633, %v782_v5  }
  0x4d   :  { %653 = vset.pattern.permute.xlu0 %v706_v16  ;;  %634 = vset.pattern.permute.xlu1 %v706_v16 }
  0x4e   :  { %425 = vperm.xlu0 %653, %v835_v23   ;;  %189 = vperm.xlu1 %634, %v782_v5  }
  0x52   :  { %656 = vset.pattern.permute.xlu0 %v708_v18  ;;  %635 = vset.pattern.permute.xlu1 %v711_v21 }
  0x53   :  { %455 = vperm.xlu0 %656, %v835_v23   ;;  %313 = vperm.xlu1 %635, %v789_v7  }
  0x57   :  { %659 = vset.pattern.permute.xlu0 %v712_v22  ;;  %637 = vset.pattern.permute.xlu1 %v713_v24 }
  0x58   :  { %485 = vperm.xlu0 %659, %v835_v23   ;;  %329 = vperm.xlu1 %637, %v789_v7  }
  0x5c   :  { %662 = vset.pattern.permute.xlu0 %v713_v24  ;;  %638 = vset.pattern.permute.xlu1 %v702_v12 }
  0x5d   :  { %515 = vperm.xlu0 %662, %v835_v23   ;;  %221 = vperm.xlu1 %638, %v782_v5  }
  0x61   :  { %665 = vset.pattern.permute.xlu0 %v698_v2  ;;  %641 = vset.pattern.permute.xlu1 %v708_v18 }
  0x62   :  { %551 = vperm.xlu0 %665, %v538_v25   ;;  %237 = vperm.xlu1 %641, %v782_v5  }
  0x66   :  { %667 = vset.pattern.permute.xlu0 %v699_v6  ;;  %642 = vset.pattern.permute.xlu1 %v710_v20 }
  0x67   :  { %253 = vperm.xlu1 %642, %v782_v5  }
  0x6b   :  { %644 = vset.pattern.permute.xlu1 %v712_v22 }
  0x6c   :  { %285 = vperm.xlu1 %644, %v782_v5  }
  0x70   :  { %645 = vset.pattern.permute.xlu1 %v698_v2 }
  0x71   :  { %370 = vperm.xlu1 %645, %v835_v23  }
  0x75   :  { %380 = vperm.xlu1 %645, %v367_v26  }
  0x79   :  { %646 = vset.pattern.permute.xlu1 %v699_v6 }
  0x7a   :  { %385 = vperm.xlu1 %646, %v835_v23  }
  0x7d   :  { %v57_v29 = vpop.permute.xlu1 %56 }
  0x7e   :  { %v41_v31 = vpop.permute.xlu0 %40  ;;  %648 = vset.pattern.permute.xlu1 %v700_v10 }
  0x7f   :  { %395 = vperm.xlu1 %648, %v835_v23   ;;  %v52_v41 = vmul.f32 %v51_v34, %v41_v31 }
  0x81   :  { %v62_v35 = vpop.permute.xlu1 %61  ;;  %v64_v46 = vadd.f32 %v57_v29, %v52_v41 }
  0x82   :  { %v46_v36 = vpop.permute.xlu0 %45 }
  0x83   :  { %v53_v37 = vmul.f32 %v51_v34, %v46_v36  ;;  %649 = vset.pattern.permute.xlu1 %v713_v24  ;;  %v922_v36 = vsub.s32 6, %v865_v28 }
  0x84   :  { %333 = vperm.xlu1 %649, %v782_v5  }
  0x85   :  { %v65_v42 = vadd.f32 %v62_v35, %v53_v37 }
  0x86   :  { %v100_v39 = vpop.permute.xlu0 %99  ;;  %v72_v40 = vpop.permute.xlu1 %71 }
  0x87   :  { %v79_v43 = vmul.f32 %v77_v38, %v72_v40 }
  0x88   :  { %651 = vset.pattern.permute.xlu1 %v705_v15 }
  0x89   :  { %v883_v44 = vadd.f32 %v79_v43, %v65_v42  ;;  %349 = vperm.xlu1 %651, %v782_v5  }
  0x8b   :  { %v68_v45 = vpop.permute.xlu0 %67  ;;  %v95_v48 = vpop.permute.xlu1 %94  ;;  %v85_v34 = vmul.f32 0.2, %v883_v44  ;;  %vm83_vm1 = vcmp.gt.f32.partialorder %v883_v44, 0.0 }
  0x8c   :  { %v78_v47 = vmul.f32 %v77_v38, %v68_v45 }
  0x8d   :  { %652 = vset.pattern.permute.xlu1 %v701_v11  ;;  %v903_v11 = vsub.s32 3, %v865_v28  ;;  %v87_v42 = vsel %vm83_vm1, %v883_v44, %v85_v34 }
  0x8e   :  { %v80_v49 = vadd.f32 %v78_v47, %v64_v46  ;;  %415 = vperm.xlu1 %652, %v835_v23  }
  0x8f   :  { %v111_v51 = vpop.permute.xlu1 %110  ;;  %v122_v52 = vpop.permute.xlu0 %121 }
  0x90   :  { %vm82_vm0 = vcmp.gt.f32.partialorder %v80_v49, 0.0  ;;  %v84_v50 = vmul.f32 0.2, %v80_v49 }
  0x92   :  { %v86_v53 = vsel %vm82_vm0, %v80_v49, %v84_v50  ;;  %654 = vset.pattern.permute.xlu1 %v704_v14  ;;  %v243_v50 = vrot.slane %v87_v42, %v869_v30 }
  0x93   :  { %v105_v54 = vrot.slane %v86_v53, %v869_v30  ;;  %435 = vperm.xlu1 %654, %v835_v23   ;;  %v116_v55 = vpop.permute.xlu1 %115  ;;  %v131_v60 = vrot.slane %v86_v53, %v877_v33  ;;  %v147_v61 = vrot.slane %v86_v53, %v892_v57  ;;  %v163_v14 = vrot.slane %v86_v53, %v903_v11 }
  0x94   :  { %v142_v58 = vpop.permute.xlu0 %141  ;;  %v195_v32 = vrot.slane %v86_v53, %v914_v27 }
  0x95   :  { %v107_v56 = vmul.f32 %v105_v54, %v100_v39  ;;  %v149_v0 = vmul.f32 %v147_v61, %v142_v58  ;;  %v106_v7 = vmul.f32 %v105_v54, %v95_v48  ;;  %v926_v39 = vsub.s32 7, %v865_v28 }
  0x96   :  { %v259_v54 = vrot.slane %v87_v42, %v877_v33 }
  0x97   :  { %v119_v59 = vadd.f32 %v116_v55, %v107_v56  ;;  %655 = vset.pattern.permute.xlu1 %v702_v12  ;;  %v118_v10 = vadd.f32 %v111_v51, %v106_v7  ;;  %v132_v12 = vmul.f32 %v131_v60, %v122_v52  ;;  %v227_v43 = vrot.slane %v86_v53, %v926_v39 }
  0x98   :  { %445 = vperm.xlu1 %655, %v835_v23   ;;  %v126_v62 = vpop.permute.xlu1 %125  ;;  %v275_v55 = vrot.slane %v87_v42, %v892_v57 }
  0x99   :  { %v133_v63 = vmul.f32 %v131_v60, %v126_v62  ;;  %v170_v3 = vpop.permute.xlu0 %169  ;;  %v134_v18 = vadd.f32 %v132_v12, %v118_v10  ;;  %v291_v60 = vrot.slane %v87_v42, %v903_v11 }
  0x9b   :  { %v135_v1 = vadd.f32 %v133_v63, %v119_v59 }
  0x9c   :  { %657 = vset.pattern.permute.xlu1 %v710_v20 }
  0x9d   :  { %465 = vperm.xlu1 %657, %v835_v23   ;;  %v138_v4 = vpop.permute.xlu1 %137  ;;  %v151_v5 = vadd.f32 %v149_v0, %v135_v1 }
  0x9e   :  { %v218_v8 = vpop.permute.xlu0 %217  ;;  %v148_v13 = vmul.f32 %v147_v61, %v138_v4 }
  0x9f   :  { %v228_v47 = vmul.f32 %v227_v43, %v218_v8 }
  0xa0   :  { %v150_v25 = vadd.f32 %v148_v13, %v134_v18  ;;  %v323_v13 = vrot.slane %v87_v42, %v914_v27 }
  0xa1   :  { %658 = vset.pattern.permute.xlu1 %v707_v17  ;;  %v911_v17 = vsub.s32 4, %v865_v28  ;;  %v537_v28 = vld [vmem:[%s975_s7] sm:$0x3]  ;;  %s714_s7 = smov [#allocation2]  }
  0xa2   :  { %475 = vperm.xlu1 %658, %v835_v23   ;;  %v154_v9 = vpop.permute.xlu1 %153  ;;  %s592_s27 = sshll.u32 %s714_s7, 4  ;;  %s593_s27 = int_to_ptr.vmem [resolvable:$true] %s592_s27 }
  0xa3   :  { %v164_v20 = vmul.f32 %v163_v14, %v154_v9  ;;  %v907_v22 = vpop.permute.xlu0 %205  ;;  %v179_v29 = vrot.slane %v86_v53, %v911_v17  ;;  %v307_v63 = vrot.slane %v87_v42, %v911_v17  ;;  %s676_s28 = scalar_lea.vmem %s593_s27, 32  ;;  %p681_p1 = scmp.lt.s32.totalorder %s593_s27, %s593_s27 }
  0xa4   :  { %p677_p0 = scmp.ne.s32.totalorder %s593_s27, %s676_s28  ;;  %p682_p2 = scmp.lt.s32.totalorder %s676_s28, %s676_s28 }
  0xa5   :  { %v166_v31 = vadd.f32 %v164_v20, %v150_v25  ;;  %v180_v35 = vmul.f32 %v179_v29, %v170_v3 }
  0xa6   :  { %660 = vset.pattern.permute.xlu1 %v709_v19  ;;  %v158_v16 = vpop.permute.xlu1 %157  ;;  %p683_p3 = por %p682_p2, %p681_p1 }
  0xa7   :  { %v165_v24 = vmul.f32 %v163_v14, %v158_v16  ;;  %495 = vperm.xlu1 %660, %v835_v23   ;;  %v182_v40 = vadd.f32 %v180_v35, %v166_v31  ;;  %v355_v31 = vrot.slane %v87_v42, %v926_v39 }
  0xa8   :  { %v346_v37 = vpop.permute.xlu0 %345  ;;  %p684_p4 = pnand %p683_p3, %p677_p0 }
  0xa9   :  { %v167_v26 = vadd.f32 %v165_v24, %v151_v5  ;;  %v339_v24 = vrot.slane %v87_v42, %v922_v36  ;;  %v356_v34 = vmul.f32 %v355_v31, %v346_v37 }
  0xab   :  { %661 = vset.pattern.permute.xlu1 %v711_v21  ;;  %v186_v19 = vpop.permute.xlu1 %185  ;;  %v211_v21 = vrot.slane %v86_v53, %v922_v36 }
  0xac   :  { %505 = vperm.xlu1 %661, %v835_v23   ;;  %v196_v38 = vmul.f32 %v195_v32, %v186_v19 }
  0xad   :  { %v266_v48 = vpop.permute.xlu0 %265  ;;  %v213_v10 = vmul.f32 %v211_v21, %v907_v22 }
  0xae   :  { %v198_v45 = vadd.f32 %v196_v38, %v182_v40  ;;  %v276_v58 = vmul.f32 %v275_v55, %v266_v48 }
  0xb0   :  { %663 = vset.pattern.permute.xlu1 %v705_v15  ;;  %v202_v41 = vpop.permute.xlu1 %201 }
  0xb1   :  { %v212_v46 = vmul.f32 %v211_v21, %v202_v41  ;;  %525 = vperm.xlu1 %663, %v835_v23   ;;  %v270_v53 = vpop.permute.xlu0 %269 }
  0xb3   :  { %v214_v49 = vadd.f32 %v212_v46, %v198_v45 }
  0xb5   :  { %664 = vset.pattern.permute.xlu1 %v698_v2  ;;  %v234_v15 = vpop.permute.xlu1 %233  ;;  %v230_v51 = vadd.f32 %v228_v47, %v214_v49  ;;  %v277_v47 = vmul.f32 %v275_v55, %v270_v53 }
  0xb6   :  { %v244_v44 = vmul.f32 %v243_v50, %v234_v15  ;;  %541 = vperm.xlu1 %664, %v537_v28   ;;  %v298_v2 = vpop.permute.xlu0 %297 }
  0xb7   :  { %v308_v1 = vmul.f32 %v307_v63, %v298_v2 }
  0xb8   :  { %v246_v52 = vadd.f32 %v244_v44, %v230_v51 }
  0xba   :  { %666 = vset.pattern.permute.xlu1 %v699_v6  ;;  %v250_v23 = vpop.permute.xlu1 %249  ;;  %v302_v45 = vpop.permute.xlu0 %301 }
  0xbb   :  { %v260_v56 = vmul.f32 %v259_v54, %v250_v23  ;;  %556 = vperm.xlu1 %666, %v537_v28   ;;  %v309_v42 = vmul.f32 %v307_v63, %v302_v45 }
  0xbd   :  { %v262_v59 = vadd.f32 %v260_v56, %v246_v52 }
  0xbf   :  { %v282_v61 = vpop.permute.xlu1 %281  ;;  %v278_v62 = vadd.f32 %v276_v58, %v262_v59  ;;  %v318_v51 = vpop.permute.xlu0 %317 }
  0xc0   :  { %v292_v0 = vmul.f32 %v291_v60, %v282_v61  ;;  %v325_v37 = vmul.f32 %v323_v13, %v318_v51 }
  0xc2   :  { %v294_v3 = vadd.f32 %v292_v0, %v278_v62 }
  0xc4   :  { %v174_v4 = vpop.permute.xlu1 %173  ;;  %v310_v5 = vadd.f32 %v308_v1, %v294_v3 }
  0xc5   :  { %v181_v6 = vmul.f32 %v179_v29, %v174_v4 }
  0xc7   :  { %v183_v7 = vadd.f32 %v181_v6, %v167_v26 }
  0xc9   :  { %v190_v8 = vpop.permute.xlu1 %189 }
  0xca   :  { %v197_v9 = vmul.f32 %v195_v32, %v190_v8 }
  0xcc   :  { %v199_v12 = vadd.f32 %v197_v9, %v183_v7  ;;  %v406_v7 = vpop.permute.xlu0 %405 }
  0xce   :  { %v314_v14 = vpop.permute.xlu1 %313  ;;  %v215_v16 = vadd.f32 %v213_v10, %v199_v12 }
  0xcf   :  { %v324_v18 = vmul.f32 %v323_v13, %v314_v14 }
  0xd1   :  { %v326_v20 = vadd.f32 %v324_v18, %v310_v5 }
  0xd3   :  { %v330_v25 = vpop.permute.xlu1 %329 }
  0xd4   :  { %v340_v19 = vmul.f32 %v339_v24, %v330_v25 }
  0xd6   :  { %v342_v29 = vadd.f32 %v340_v19, %v326_v20 }
  0xd8   :  { %v358_v26 = vadd.f32 %v356_v34, %v342_v29  ;;  %v222_v35 = vpop.permute.xlu1 %221 }
  0xd9   :  { %v229_v32 = vmul.f32 %v227_v43, %v222_v35 }
  0xda   :  { %v362_v59 = vmul.f32 0.2, %v358_v26  ;;  %vm360_vm2 = vcmp.gt.f32.partialorder %v358_v26, 0.0 }
  0xdb   :  { %v231_v38 = vadd.f32 %v229_v32, %v215_v16 }
  0xdc   :  { %v364_v2 = vsel %vm360_vm2, %v358_v26, %v362_v59 }
  0xdd   :  { %v238_v22 = vpop.permute.xlu1 %237  ;;  %v391_v53 = vrot.slane %v364_v2, %v877_v33  ;;  %v401_v62 = vrot.slane %v364_v2, %v892_v57  ;;  %v411_v4 = vrot.slane %v364_v2, %v903_v11  ;;  %v421_v13 = vrot.slane %v364_v2, %v911_v17 }
  0xde   :  { %v245_v21 = vmul.f32 %v243_v50, %v238_v22  ;;  %v431_v16 = vrot.slane %v364_v2, %v914_v27  ;;  %v441_v26 = vrot.slane %v364_v2, %v922_v36  ;;  %v451_v22 = vrot.slane %v364_v2, %v926_v39 }
  0xdf   :  { %v412_v12 = vmul.f32 %v411_v4, %v406_v7 }
  0xe0   :  { %v247_v40 = vadd.f32 %v245_v21, %v231_v38 }
  0xe2   :  { %v254_v41 = vpop.permute.xlu1 %253 }
  0xe3   :  { %v261_v46 = vmul.f32 %v259_v54, %v254_v41  ;;  %v376_v54 = vrot.slane %v364_v2, %v869_v30 }
  0xe5   :  { %v263_v48 = vadd.f32 %v261_v46, %v247_v40 }
  0xe7   :  { %v286_v49 = vpop.permute.xlu1 %285  ;;  %v279_v28 = vadd.f32 %v277_v47, %v263_v48 }
  0xe8   :  { %v293_v15 = vmul.f32 %v291_v60, %v286_v49 }
  0xea   :  { %v295_v44 = vadd.f32 %v293_v15, %v279_v28 }
  0xec   :  { %v311_v52 = vadd.f32 %v309_v42, %v295_v44  ;;  %v371_v23 = vpop.permute.xlu1 %370 }
  0xed   :  { %v377_v61 = vmul.f32 %v376_v54, %v371_v23 }
  0xee   :  { %v327_v56 = vadd.f32 %v325_v37, %v311_v52 }
  0xf0   :  { %v381_v43 = vpop.permute.xlu1 %380 }
  0xf1   :  { %v383_v0 = vadd.f32 %v381_v43, %v377_v61 }
  0xf5   :  { %v386_v58 = vpop.permute.xlu1 %385 }
  0xf6   :  { %v392_v60 = vmul.f32 %v391_v53, %v386_v58 }
  0xf8   :  { %v393_v5 = vadd.f32 %v392_v60, %v383_v0 }
  0xfa   :  { %v396_v50 = vpop.permute.xlu1 %395 }
  0xfb   :  { %v402_v1 = vmul.f32 %v401_v62, %v396_v50 }
  0xfd   :  { %v403_v9 = vadd.f32 %v402_v1, %v393_v5 }
  0xff   :  { %v334_v55 = vpop.permute.xlu1 %333  ;;  %v413_v18 = vadd.f32 %v412_v12, %v403_v9 }
 0x100   :  { %v341_v63 = vmul.f32 %v339_v24, %v334_v55  ;;  %v426_v24 = vpop.permute.xlu0 %425 }
 0x101   :  { %v432_v34 = vmul.f32 %v431_v16, %v426_v24 }
 0x102   :  { %v343_v3 = vadd.f32 %v341_v63, %v327_v56 }
 0x104   :  { %v350_v6 = vpop.permute.xlu1 %349  ;;  %v456_v45 = vpop.permute.xlu0 %455 }
 0x105   :  { %v357_v8 = vmul.f32 %v355_v31, %v350_v6 }
 0x107   :  { %v359_v10 = vadd.f32 %v357_v8, %v343_v3 }
 0x108   :  { %v486_v23 = vpop.permute.xlu0 %485 }
 0x109   :  { %v416_v14 = vpop.permute.xlu1 %415  ;;  %v363_v25 = vmul.f32 0.2, %v359_v10  ;;  %vm361_vm3 = vcmp.gt.f32.partialorder %v359_v10, 0.0 }
 0x10a   :  { %v422_v20 = vmul.f32 %v421_v13, %v416_v14 }
 0x10b   :  { %v365_v35 = vsel %vm361_vm3, %v359_v10, %v363_v25 }
 0x10c   :  { %v423_v19 = vadd.f32 %v422_v20, %v413_v18  ;;  %v461_v38 = vrot.slane %v365_v35, %v869_v30  ;;  %v471_v48 = vrot.slane %v365_v35, %v877_v33  ;;  %v491_v42 = vrot.slane %v365_v35, %v903_v11  ;;  %v516_v61 = vpop.permute.xlu0 %515 }
 0x10d   :  { %v481_v44 = vrot.slane %v365_v35, %v892_v57  ;;  %v501_v58 = vrot.slane %v365_v35, %v911_v17  ;;  %v521_v53 = vrot.slane %v365_v35, %v922_v36  ;;  %v511_v55 = vrot.slane %v365_v35, %v914_v27 }
 0x10e   :  { %v436_v29 = vpop.permute.xlu1 %435  ;;  %v433_v31 = vadd.f32 %v432_v34, %v423_v19  ;;  %v462_v46 = vmul.f32 %v461_v38, %v456_v45  ;;  %v492_v56 = vmul.f32 %v491_v42, %v486_v23  ;;  %v531_v63 = vrot.slane %v365_v35, %v926_v39 }
 0x10f   :  { %v442_v32 = vmul.f32 %v441_v26, %v436_v29  ;;  %v522_v62 = vmul.f32 %v521_v53, %v516_v61 }
 0x110   :  { %v552_v27 = vpop.permute.xlu0 %551 }
 0x111   :  { %v443_v40 = vadd.f32 %v442_v32, %v433_v31 }
 0x113   :  { %v446_v21 = vpop.permute.xlu1 %445 }
 0x114   :  { %v452_v41 = vmul.f32 %v451_v22, %v446_v21 }
 0x116   :  { %v453_v47 = vadd.f32 %v452_v41, %v443_v40 }
 0x118   :  { %v466_v49 = vpop.permute.xlu1 %465  ;;  %v463_v28 = vadd.f32 %v462_v46, %v453_v47 }
 0x119   :  { %v472_v15 = vmul.f32 %v471_v48, %v466_v49 }
 0x11b   :  { %v473_v51 = vadd.f32 %v472_v15, %v463_v28 }
 0x11d   :  { %v476_v37 = vpop.permute.xlu1 %475 }
 0x11e   :  { %v482_v52 = vmul.f32 %v481_v44, %v476_v37 }
 0x120   :  { %v483_v43 = vadd.f32 %v482_v52, %v473_v51 }
 0x122   :  { %v496_v59 = vpop.permute.xlu1 %495  ;;  %v493_v50 = vadd.f32 %v492_v56, %v483_v43 }
 0x123   :  { %v502_v2 = vmul.f32 %v501_v58, %v496_v59 }
 0x125   :  { %v503_v54 = vadd.f32 %v502_v2, %v493_v50 }
 0x127   :  { %v506_v60 = vpop.permute.xlu1 %505 }
 0x128   :  { %v512_v11 = vmul.f32 %v511_v55, %v506_v60 }
 0x12a   :  { %v513_v57 = vadd.f32 %v512_v11, %v503_v54 }
 0x12c   :  { %v526_v0 = vpop.permute.xlu1 %525  ;;  %v523_v1 = vadd.f32 %v522_v62, %v513_v57 }
 0x12d   :  { %v532_v3 = vmul.f32 %v531_v63, %v526_v0 }
 0x12f   :  { %v533_v4 = vadd.f32 %v532_v3, %v523_v1 }
 0x131   :  { %v535_v17 = vmul.f32 0.2, %v533_v4  ;;  %v542_v5 = vpop.permute.xlu1 %541  ;;  %vm534_vm4 = vcmp.gt.f32.partialorder %v533_v4, 0.0 }
 0x133   :  { %v536_v6 = vsel %vm534_vm4, %v533_v4, %v535_v17 }
 0x134   :  { %v547_v7 = vrot.slane %v536_v6, %v869_v30  ;;  %v562_v36 = vrot.slane %v536_v6, %v877_v33 }
 0x136   :  { %v548_v8 = vmul.f32 %v547_v7, %v542_v5  ;;  %v557_v9 = vpop.permute.xlu1 %556 }
 0x137   :  { %v563_v10 = vmul.f32 %v562_v36, %v557_v9 }
 0x138   :  { %v554_v12 = vadd.f32 %v552_v27, %v548_v8 }
 0x13a   :  { %v564_v13 = vadd.f32 %v563_v10, %v554_v12 }
 0x13c   :  { %v566_v14 = vrot.slane %v564_v13, 1 }
 0x13e   :  { %v568_v39 = vsub.f32 %v564_v13, %v566_v14 }
 0x140   :  { %v569_v16 = vsub.f32 0.0, %v568_v39  ;;  %v575_v18 = vmul.f32 1.442695, %v568_v39 }
 0x142   :  { %v570_v20 = vmul.f32 1.442695, %v569_v16  ;;  %668 = vpow2.f32 %v575_v18 }
 0x144   :  { %670 = vpow2.f32 %v570_v20 }
 0x14f   :  { %v669_v24 = vpop.eup %668 }
 0x150   :  { %v577_v25 = vadd.f32 1.0, %v669_v24 }
 0x151   :  { %v671_v19 = vpop.eup %670 }
 0x152   :  { %v572_v34 = vadd.f32 1.0, %v671_v19  ;;  %672 = vrcp.f32 %v577_v25 }
 0x154   :  { %674 = vrcp.f32 %v572_v34 }
 0x15f   :  { %v673_v30 = vpop.eup %672 }
 0x160   :  { %v581_v33 = vrot.slane %v673_v30, 7 }
 0x161   :  { %v675_v29 = vpop.eup %674 }
 0x162   :  { %v584_v26 = vsel %vm583_vm5, %v675_v29, %v581_v33 }
 0x163   :  { %585 = vst [vmem:[#allocation2] sm:$0x3] %v584_v26 }
 0x164   :  { %687 = shalt.err (!%p684_p4)
}
 0x165   :  { %595 = dma.vmem_to_hbm [thread:$0]  %s593_s27, 32, %s977_s9, [#allocation3]  }
 0x166   :  { %696 = dma.done.wait [#allocation3], 32  }
 0x167   :  { %697 = vsyncadd [#allocation3], 4294967264 }
 0x168   :  { %599 = vsyncpa [#allocation3], 1 }

</bundles_post_ra>
